<compile_context>
chip_gen: v7x
topology: tpu7x:2x2x1
jax: 0.10.0
libtpu: 0.0.40
codegen_flags: <defaults>
</compile_context>

<pallas_src>
import jax
import jax.numpy as jnp
from jax.experimental import pallas as pl
from jax.experimental.pallas import tpu as pltpu

_SUBLANE = 8
_LANE = 128
_MAX_TILE = 512  # keeps double-buffered f32 tiles ~<10 MiB (safe on v7x's 64 MiB VMEM)


def _round_up(n, m):
    return ((n + m - 1) // m) * m


def _pick_tile(dim, align):
    return min(_MAX_TILE, _round_up(dim, align))


def _pad2(a, rows, cols):
    pr, pc = rows - a.shape[0], cols - a.shape[1]
    if pr == 0 and pc == 0:
        return a
    return jnp.pad(a, ((0, pr), (0, pc)))


def _vmem_limit_bytes():
    # ~96 MiB on 128-MiB parts (v5e/v6e), ~48 MiB on 64-MiB v7x.
    try:
        cap = int(pltpu.get_tpu_info().vmem_capacity_bytes)
        if cap <= 0:
            cap = 64 * 1024 * 1024
    except Exception:
        cap = 64 * 1024 * 1024
    return (cap * 3) // 4


def _fused_linear_l1_kernel(x_ref, wt_ref, b_ref, y_ref, l1_ref, acc_ref):
    i = pl.program_id(0)   # M tile (parallel)
    k = pl.program_id(2)   # K tile (innermost, reduction)
    nk = pl.num_programs(2)

    @pl.when(k == 0)
    def _():
        acc_ref[...] = jnp.zeros_like(acc_ref)

    # MXU matmul; weight already stored as (K, N) so the contraction is
    # (1,)x(0,) with no in-kernel transpose.
    acc_ref[...] += jnp.dot(x_ref[...], wt_ref[...],
                            preferred_element_type=jnp.float32)

    # Fused ||W||_1: visit each W tile exactly once (first M tile) and
    # accumulate over K into the lane-dense (8,128) partial block (i=0, j).
    @pl.when(jnp.logical_and(i == 0, k == 0))
    def _():
        l1_ref[...] = jnp.zeros_like(l1_ref)

    @pl.when(i == 0)
    def _():
        l1_ref[...] += jnp.sum(jnp.abs(wt_ref[...].astype(jnp.float32)))

    # Bias add + cast + store only on the last K step.
    @pl.when(k == nk - 1)
    def _():
        y_ref[...] = (acc_ref[...] + b_ref[...]).astype(y_ref.dtype)


def lasso_regression_apply(x, weight, bias, *, tm=None, tn=None, tk=None):
    """Returns (y = x @ W^T + b, ||W||_1) from one fused pallas_call.

    x:      (B, in_dim)      float32 / bf16
    weight: (o_dim, in_dim)  PyTorch layout
    bias:   (o_dim,)
    """
    B, in_dim = x.shape
    o_dim = weight.shape[0]

    tm = tm if tm is not None else _pick_tile(B, _SUBLANE)
    tn = tn if tn is not None else _pick_tile(o_dim, _LANE)
    tk = tk if tk is not None else _pick_tile(in_dim, _LANE)
    assert tm % _SUBLANE == 0 and tn % _LANE == 0 and tk % _LANE == 0

    Mp, Np, Kp = _round_up(B, tm), _round_up(o_dim, tn), _round_up(in_dim, tk)
    n_i, n_j, n_k = Mp // tm, Np // tn, Kp // tk

    # One-time HBM-side transpose + zero pad (exact for both matmul and |W|).
    x_p = _pad2(x, Mp, Kp)
    wt_p = _pad2(weight.T, Kp, Np)
    b_p = _pad2(bias.reshape(1, o_dim), 1, Np)

    cost = pl.CostEstimate(
        flops=2 * Mp * Np * Kp,
        transcendentals=0,
        bytes_accessed=4 * (Mp * Kp + Kp * Np + Np + Mp * Np
                            + n_i * _SUBLANE * n_j * _LANE),
    )

    # TODO(synk): for single-step grids pipeline_mode=pl.Buffered(1) would halve
    # resident VMEM; left at the default since the footprint here is tiny.
    y_p, l1_parts = pl.pallas_call(
        _fused_linear_l1_kernel,
        out_shape=(
            jax.ShapeDtypeStruct((Mp, Np), x.dtype),
            jax.ShapeDtypeStruct((n_i * _SUBLANE, n_j * _LANE), jnp.float32),
        ),
        grid_spec=pltpu.PrefetchScalarGridSpec(
            num_scalar_prefetch=0,
            grid=(n_i, n_j, n_k),
            in_specs=[
                pl.BlockSpec((tm, tk), lambda i, j, k: (i, k)),
                pl.BlockSpec((tk, tn), lambda i, j, k: (k, j)),
                pl.BlockSpec((1, tn), lambda i, j, k: (0, j)),
            ],
            out_specs=(
                pl.BlockSpec((tm, tn), lambda i, j, k: (i, j)),
                pl.BlockSpec((_SUBLANE, _LANE), lambda i, j, k: (i, j)),
            ),
            scratch_shapes=[pltpu.VMEM((tm, tn), jnp.float32)],
        ),
        compiler_params=pltpu.CompilerParams(
            dimension_semantics=("parallel", "parallel", "arbitrary"),
            vmem_limit_bytes=_vmem_limit_bytes(),
        ),
        cost_estimate=cost,
    )(x_p, wt_p, b_p)

    # Every element of l1_parts block (0, j) holds the L1 of column-block j;
    # take one representative per block and sum the n_j partials.
    l1 = jnp.sum(l1_parts[0, ::_LANE])
    return y_p[:B, :o_dim], l1


def lasso_regression_forward(x, weight, bias):
    """forward(x) of the PyTorch module: just the linear layer."""
    y, _ = lasso_regression_apply(x, weight, bias)
    return y


def _l1_only_kernel(w_ref, l1_ref):
    r = pl.program_id(0)
    c = pl.program_id(1)

    @pl.when(jnp.logical_and(r == 0, c == 0))
    def _():
        l1_ref[...] = jnp.zeros_like(l1_ref)

    l1_ref[...] += jnp.sum(jnp.abs(w_ref[...].astype(jnp.float32)))


def lasso_term(weight):
    """Standalone ||W||_1 without a throwaway matmul."""
    o_dim, in_dim = weight.shape
    tr = _pick_tile(o_dim, _SUBLANE)
    tc = _pick_tile(in_dim, _LANE)
    Rp, Cp = _round_up(o_dim, tr), _round_up(in_dim, tc)
    w_p = _pad2(weight, Rp, Cp)

    l1 = pl.pallas_call(
        _l1_only_kernel,
        out_shape=jax.ShapeDtypeStruct((1, 1), jnp.float32),
        grid_spec=pltpu.PrefetchScalarGridSpec(
            num_scalar_prefetch=0,
            grid=(Rp // tr, Cp // tc),
            in_specs=[pl.BlockSpec((tr, tc), lambda r, c: (r, c))],
            out_specs=pl.BlockSpec((1, 1), lambda r, c: (0, 0)),
        ),
        compiler_params=pltpu.CompilerParams(
            dimension_semantics=("arbitrary", "arbitrary"),
            vmem_limit_bytes=_vmem_limit_bytes(),
        ),
    )(w_p)
    return l1[0, 0]


if __name__ == "__main__":
    key = jax.random.PRNGKey(0)
    kx, kw, kb, kx2, kw2, kb2 = jax.random.split(key, 6)

    # --- module-sized shapes: in_dim=32, o_dim=8, batch=4 -------------------
    B, in_dim, o_dim = 4, 32, 8
    bound = 1.0 / jnp.sqrt(jnp.float32(in_dim))   # torch.nn.Linear init range
    weight = jax.random.uniform(kw, (o_dim, in_dim), jnp.float32, -bound, bound)
    bias = jax.random.uniform(kb, (o_dim,), jnp.float32, -bound, bound)
    x = jax.random.normal(kx, (B, in_dim), jnp.float32)

    y, l1 = lasso_regression_apply(x, weight, bias)
    jax.block_until_ready((y, l1))
    y_ref = x @ weight.T + bias
    assert y.shape == (B, o_dim)
    assert jnp.allclose(y, y_ref, atol=1e-5, rtol=1e-5)
    assert jnp.allclose(l1, jnp.sum(jnp.abs(weight)), atol=1e-5, rtol=1e-5)

    l1_alone = lasso_term(weight)
    jax.block_until_ready(l1_alone)
    assert jnp.allclose(l1_alone, jnp.sum(jnp.abs(weight)), atol=1e-5, rtol=1e-5)

    # --- multi-tile grid path (forced small tiles) to exercise the K
    #     accumulator, last-K bias add, and first-visit L1 accumulation -------
    B2, in2, o2 = 16, 256, 256
    w2 = jax.random.normal(kw2, (o2, in2), jnp.float32) * 0.05
    b2 = jax.random.normal(kb2, (o2,), jnp.float32) * 0.05
    x2 = jax.random.normal(kx2, (B2, in2), jnp.float32)
    y2, l12 = lasso_regression_apply(x2, w2, b2, tm=8, tn=128, tk=128)
    jax.block_until_ready((y2, l12))
    y2_ref = x2 @ w2.T + b2
    assert jnp.allclose(y2, y2_ref, atol=1e-4, rtol=1e-4)
    assert jnp.allclose(l12, jnp.sum(jnp.abs(w2)), rtol=1e-4, atol=1e-2)

    print("KERNEL_OK")
</pallas_src>

<mosaic_0001>
module attributes {stable_mosaic.version = 11 : i64} {
  func.func @_fused_linear_l1_kernel(%arg0: i32, %arg1: i32, %arg2: i32, %arg3: memref<8x128xf32, #tpu.memory_space<vmem>>, %arg4: memref<128x128xf32, #tpu.memory_space<vmem>>, %arg5: memref<1x128xf32, #tpu.memory_space<vmem>>, %arg6: memref<8x128xf32, #tpu.memory_space<vmem>>, %arg7: memref<8x128xf32, #tpu.memory_space<vmem>>, %arg8: memref<8x128xf32, #tpu.memory_space<vmem>>) attributes {dimension_semantics = [#tpu.dimension_semantics<parallel>, #tpu.dimension_semantics<parallel>, #tpu.dimension_semantics<arbitrary>], iteration_bounds = array<i64: 1, 1, 1>, scalar_prefetch = 0 : i64, scratch_operands = 1 : i64, tpu.core_type = #tpu.core_type<tc>, window_params = [{transform_indices = @transform_0, window_bounds = array<i64: 8, 128>}, {transform_indices = @transform_1, window_bounds = array<i64: 128, 128>}, {transform_indices = @transform_2, window_bounds = array<i64: 1, 128>}, {transform_indices = @transform_3, window_bounds = array<i64: 8, 128>}, {transform_indices = @transform_4, window_bounds = array<i64: 8, 128>}]} {
    %c0_i32 = arith.constant 0 : i32
    %0 = arith.cmpi eq, %arg2, %c0_i32 : i32
    %1 = arith.extui %0 : i1 to i32
    %c0_i32_0 = arith.constant 0 : i32
    %2 = arith.cmpi ne, %1, %c0_i32_0 : i32
    scf.if %2 {
      %cst_15 = arith.constant 0.000000e+00 : f32
      %20 = vector.broadcast %cst_15 : f32 to vector<8x128xf32>
      %c0_16 = arith.constant 0 : index
      %c0_17 = arith.constant 0 : index
      %21 = vector.load %arg8[%c0_16, %c0_17] : memref<8x128xf32, #tpu.memory_space<vmem>>, vector<8x128xf32>
      tpu.vector_store %arg8[%c0_16, %c0_17], %20 {strides = array<i32>} : memref<8x128xf32, #tpu.memory_space<vmem>>, vector<8x128xf32>,
    } else {
    }
    %c0 = arith.constant 0 : index
    %c0_1 = arith.constant 0 : index
    %3 = vector.load %arg8[%c0, %c0_1] : memref<8x128xf32, #tpu.memory_space<vmem>>, vector<8x128xf32>
    %c0_2 = arith.constant 0 : index
    %c0_3 = arith.constant 0 : index
    %4 = vector.load %arg3[%c0_2, %c0_3] : memref<8x128xf32, #tpu.memory_space<vmem>>, vector<8x128xf32>
    %c0_4 = arith.constant 0 : index
    %c0_5 = arith.constant 0 : index
    %5 = vector.load %arg4[%c0_4, %c0_5] : memref<128x128xf32, #tpu.memory_space<vmem>>, vector<128x128xf32>
    %cst = arith.constant dense<0.000000e+00> : vector<8x128xf32>
    %6 = tpu.matmul %4, %5, %cst {dimension_numbers = #tpu.dot_dimension_numbers<[1], [0], [0], [1], [0, 0, 1, 1], [], []>} : vector<8x128xf32>, vector<128x128xf32>, vector<8x128xf32> -> vector<8x128xf32>
    %7 = arith.addf %3, %6 : vector<8x128xf32>
    %c0_6 = arith.constant 0 : index
    %c0_7 = arith.constant 0 : index
    %8 = vector.load %arg8[%c0_6, %c0_7] : memref<8x128xf32, #tpu.memory_space<vmem>>, vector<8x128xf32>
    tpu.vector_store %arg8[%c0_6, %c0_7], %7 {strides = array<i32>} : memref<8x128xf32, #tpu.memory_space<vmem>>, vector<8x128xf32>,
    %c0_i32_8 = arith.constant 0 : i32
    %9 = arith.cmpi eq, %arg0, %c0_i32_8 : i32
    %c0_i32_9 = arith.constant 0 : i32
    %10 = arith.cmpi eq, %arg2, %c0_i32_9 : i32
    %11 = arith.andi %9, %10 : i1
    %12 = arith.extui %11 : i1 to i32
    %c0_i32_10 = arith.constant 0 : i32
    %13 = arith.cmpi ne, %12, %c0_i32_10 : i32
    scf.if %13 {
      %cst_15 = arith.constant 0.000000e+00 : f32
      %20 = vector.broadcast %cst_15 : f32 to vector<8x128xf32>
      %c0_16 = arith.constant 0 : index
      %c0_17 = arith.constant 0 : index
      %21 = vector.load %arg7[%c0_16, %c0_17] : memref<8x128xf32, #tpu.memory_space<vmem>>, vector<8x128xf32>
      tpu.vector_store %arg7[%c0_16, %c0_17], %20 {strides = array<i32>} : memref<8x128xf32, #tpu.memory_space<vmem>>, vector<8x128xf32>,
    } else {
    }
    %c0_i32_11 = arith.constant 0 : i32
    %14 = arith.cmpi eq, %arg0, %c0_i32_11 : i32
    %15 = arith.extui %14 : i1 to i32
    %c0_i32_12 = arith.constant 0 : i32
    %16 = arith.cmpi ne, %15, %c0_i32_12 : i32
    scf.if %16 {
      %c0_15 = arith.constant 0 : index
      %c0_16 = arith.constant 0 : index
      %20 = vector.load %arg7[%c0_15, %c0_16] : memref<8x128xf32, #tpu.memory_space<vmem>>, vector<8x128xf32>
      %c0_17 = arith.constant 0 : index
      %c0_18 = arith.constant 0 : index
      %21 = vector.load %arg4[%c0_17, %c0_18] : memref<128x128xf32, #tpu.memory_space<vmem>>, vector<128x128xf32>
      %22 = math.absf %21 : vector<128x128xf32>
      %23 = vector.shape_cast %22 : vector<128x128xf32> to vector<1x128x128xf32>
      %cst_19 = arith.constant dense<0.000000e+00> : vector<1xf32>
      %24 = vector.multi_reduction <add>, %23, %cst_19 [1, 2] : vector<1x128x128xf32> to vector<1xf32>
      %25 = vector.shape_cast %24 : vector<1xf32> to vector<1x1x1xf32>
      %26 = vector.extract %25[0, 0, 0] : f32 from vector<1x1x1xf32>
      %27 = vector.broadcast %26 : f32 to vector<8x128xf32>
      %28 = arith.addf %20, %27 : vector<8x128xf32>
      %c0_20 = arith.constant 0 : index
      %c0_21 = arith.constant 0 : index
      %29 = vector.load %arg7[%c0_20, %c0_21] : memref<8x128xf32, #tpu.memory_space<vmem>>, vector<8x128xf32>
      tpu.vector_store %arg7[%c0_20, %c0_21], %28 {strides = array<i32>} : memref<8x128xf32, #tpu.memory_space<vmem>>, vector<8x128xf32>,
    } else {
    }
    %c0_i32_13 = arith.constant 0 : i32
    %17 = arith.cmpi eq, %arg2, %c0_i32_13 : i32
    %18 = arith.extui %17 : i1 to i32
    %c0_i32_14 = arith.constant 0 : i32
    %19 = arith.cmpi ne, %18, %c0_i32_14 : i32
    scf.if %19 {
      %c0_15 = arith.constant 0 : index
      %c0_16 = arith.constant 0 : index
      %20 = vector.load %arg8[%c0_15, %c0_16] : memref<8x128xf32, #tpu.memory_space<vmem>>, vector<8x128xf32>
      %c0_17 = arith.constant 0 : index
      %c0_18 = arith.constant 0 : index
      %21 = vector.load %arg5[%c0_17, %c0_18] : memref<1x128xf32, #tpu.memory_space<vmem>>, vector<1x128xf32>
      %22 = vector.broadcast %21 : vector<1x128xf32> to vector<8x128xf32>
      %23 = arith.addf %20, %22 : vector<8x128xf32>
      %c0_19 = arith.constant 0 : index
      %c0_20 = arith.constant 0 : index
      %24 = vector.load %arg6[%c0_19, %c0_20] : memref<8x128xf32, #tpu.memory_space<vmem>>, vector<8x128xf32>
      tpu.vector_store %arg6[%c0_19, %c0_20], %23 {strides = array<i32>} : memref<8x128xf32, #tpu.memory_space<vmem>>, vector<8x128xf32>,
    } else {
    }
    return
  }
  func.func @transform_0(%arg0: i32, %arg1: i32, %arg2: i32) -> (i32, i32) {
    %c0_i32 = arith.constant 0 : i32
    return %arg0, %arg2 : i32, i32
  }
  func.func @transform_1(%arg0: i32, %arg1: i32, %arg2: i32) -> (i32, i32) {
    %c0_i32 = arith.constant 0 : i32
    return %arg2, %arg1 : i32, i32
  }
  func.func @transform_2(%arg0: i32, %arg1: i32, %arg2: i32) -> (i32, i32) {
    %c0_i32 = arith.constant 0 : i32
    %c0_i32_0 = arith.constant 0 : i32
    return %c0_i32, %arg1 : i32, i32
  }
  func.func @transform_3(%arg0: i32, %arg1: i32, %arg2: i32) -> (i32, i32) {
    %c0_i32 = arith.constant 0 : i32
    return %arg0, %arg1 : i32, i32
  }
  func.func @transform_4(%arg0: i32, %arg1: i32, %arg2: i32) -> (i32, i32) {
    %c0_i32 = arith.constant 0 : i32
    return %arg0, %arg1 : i32, i32
  }
}

</mosaic_0001>

<bundles_post_ra>
// kernel: tpu_custom_call.1
= control target key start
LH: loop header
LB: loop body
LE: loop exit
PB: predicated region body
PF: predicated region fallthrough
CT: control target
= control target key end

     0   :  { %10 = vsyncpa [#allocation4], 0  ;;  %s535_s0 = inlined_call_operand.hbm [shape: f32[8,128], index: 0, kind: input, shape index: {}]   ;;  %s536_s1 = inlined_call_operand.hbm [shape: f32[128,128], index: 1, kind: input, shape index: {}]   ;;  %s537_s2 = inlined_call_operand.vmem [shape: f32[1,128], index: 2, kind: input, shape index: {}]   ;;  %s538_s3 = inlined_call_operand.hbm [shape: f32[8,128], index: 3, kind: output, shape index: {0}]   ;;  %s539_s4 = inlined_call_operand.hbm [shape: f32[8,128], index: 4, kind: output, shape index: {1}]  }
   0x1   :  { %11 = vsyncpa [#allocation7], 0 }
   0x2   :  { %12 = vsyncpa [#allocation5], 0 }
   0x3   :  { %13 = vsyncpa [#allocation10], 0  ;;  %s435_s15 = smov [#allocation3]   ;;  %s436_s17 = smov [#allocation6]  }
   0x4   :  { %s20_s16 = sshll.u32 %s435_s15, 4  ;;  %s29_s18 = sshll.u32 %s436_s17, 4  ;;  %s21_s16 = int_to_ptr.vmem [resolvable:$true] %s20_s16  ;;  %s469_s18 = int_to_ptr.vmem [resolvable:$true] %s29_s18 }
   0x5   :  { %s339_s21 = scalar_lea.hbm %s535_s0, 128 }
   0x6   :  { %p340_p0 = scmp.ne.s32.totalorder %s535_s0, %s339_s21  ;;  %p343_p1 = scmp.lt.u32.totalorder %s339_s21, %s535_s0 }
   0x8   :  { %p345_p2 = pnand %p343_p1, %p340_p0 }
   0xa   :  { %348 = shalt.err (!%p345_p2)
}
   0xb   :  { %s349_s26 = scalar_lea.vmem %s21_s16, 128  ;;  %p354_p4 = scmp.lt.s32.totalorder %s21_s16, %s21_s16 }
   0xc   :  { %p350_p3 = scmp.ne.s32.totalorder %s21_s16, %s349_s26  ;;  %p355_p5 = scmp.lt.s32.totalorder %s349_s26, %s349_s26 }
   0xe   :  { %p356_p6 = por %p355_p5, %p354_p4 }
  0x10   :  { %p357_p7 = pnand %p356_p6, %p350_p3 }
  0x12   :  { %360 = shalt.err (!%p357_p7)
}
  0x13   :  { %23 = dma.hbm_to_vmem [thread:$0]  %s535_s0, 128, %s21_s16, [#allocation4]  }
  0x14   :  { %s361_s5 = scalar_lea.hbm %s536_s1, 2048 }
  0x15   :  { %p362_p8 = scmp.ne.s32.totalorder %s536_s1, %s361_s5  ;;  %p365_p9 = scmp.lt.u32.totalorder %s361_s5, %s536_s1 }
  0x17   :  { %p367_p10 = pnand %p365_p9, %p362_p8 }
  0x19   :  { %370 = shalt.err (!%p367_p10)
}
  0x1a   :  { %s371_s10 = scalar_lea.vmem %s469_s18, 2048  ;;  %p376_p12 = scmp.lt.s32.totalorder %s469_s18, %s469_s18 }
  0x1b   :  { %p372_p11 = scmp.ne.s32.totalorder %s469_s18, %s371_s10  ;;  %p377_p13 = scmp.lt.s32.totalorder %s371_s10, %s371_s10 }
  0x1d   :  { %p378_p0 = por %p377_p13, %p376_p12 }
  0x1f   :  { %p379_p1 = pnand %p378_p0, %p372_p11 }
  0x21   :  { %382 = shalt.err (!%p379_p1)
}
  0x22   :  { %s437_s0 = smov 128   ;;  %s438_s11 = smov 8  }
  0x23   :  { %35 = dma.hbm_to_vmem [thread:$0]  %s536_s1, 2048, %s469_s18, [#allocation7], %s437_s0, %s437_s0, %s438_s11  }
  0x24   :  { %427 = dma.done.wait [#allocation4], 128  }
  0x25   :  { %428 = vsyncadd [#allocation4], 4294967168 }
  0x26   :  { %429 = dma.done.wait [#allocation7], 2048  }
  0x27   :  { %430 = vsyncadd [#allocation7], 4294965248  ;;  %v439_v0 = vmov 0.0|0.0   ;;  %vm440_vm0 = vmmov 0   ;;  %v441_v1 = vmov 0.0   ;;  %v51_v2 = vld [vmem:[#allocation6] sm:$0xff] }
  0x28   :  { %304 = vmatprep.subr.bf16.mxu0 %v439_v0  ;;  %301 = vmatprep.mubr.msk.f32.mxu0 %vm440_vm0, %v441_v1  ;;  %v52_v3 = vld [vmem:[#allocation6 + $0x8] sm:$0xff]  ;;  %v53_v4 = vld [vmem:[#allocation6 + $0x10] sm:$0xff]  ;;  %v54_v6 = vld [vmem:[#allocation6 + $0x18] sm:$0xff]  ;;  %v165_v7 = vand.u32 2147483647, %v51_v2  ;;  %s442_s1 = smov [#allocation9]  }
  0x29   :  { %v305_v5 = vpack.c.bf16 %v52_v3, %v51_v2  ;;  %v166_v8 = vand.u32 2147483647, %v52_v3  ;;  %v308_v9 = vpack.c.bf16 %v54_v6, %v53_v4  ;;  %v167_v10 = vand.u32 2147483647, %v53_v4  ;;  %v55_v11 = vld [vmem:[#allocation6 + $0x20] sm:$0xff]  ;;  %v56_v12 = vld [vmem:[#allocation6 + $0x28] sm:$0xff] }
  0x2a   :  { %v168_v14 = vand.u32 2147483647, %v54_v6  ;;  %v311_v15 = vpack.c.bf16 %v56_v12, %v55_v11  ;;  %v169_v16 = vand.u32 2147483647, %v55_v11  ;;  %v57_v18 = vld [vmem:[#allocation6 + $0x30] sm:$0xff]  ;;  %v58_v19 = vld [vmem:[#allocation6 + $0x38] sm:$0xff] }
  0x2b   :  { %306 = vmatpush3.bf16.msra.mxu0 %v305_v5  ;;  %v181_v13 = vadd.f32 %v166_v8, %v165_v7  ;;  %v170_v20 = vand.u32 2147483647, %v56_v12  ;;  %v314_v22 = vpack.c.bf16 %v58_v19, %v57_v18  ;;  %v171_v23 = vand.u32 2147483647, %v57_v18  ;;  %v59_v25 = vld [vmem:[#allocation6 + $0x40] sm:$0xff]  ;;  %v60_v26 = vld [vmem:[#allocation6 + $0x48] sm:$0xff] }
  0x2c   :  { %307 = vmatprep.subr.bf16.mxu0 %v439_v0  ;;  %v172_v27 = vand.u32 2147483647, %v58_v19  ;;  %v317_v29 = vpack.c.bf16 %v60_v26, %v59_v25  ;;  %v173_v30 = vand.u32 2147483647, %v59_v25  ;;  %v61_v32 = vld [vmem:[#allocation6 + $0x50] sm:$0xff]  ;;  %v62_v33 = vld [vmem:[#allocation6 + $0x58] sm:$0xff] }
  0x2d   :  { %v182_v17 = vadd.f32 %v181_v13, %v167_v10  ;;  %v174_v34 = vand.u32 2147483647, %v60_v26  ;;  %v320_v36 = vpack.c.bf16 %v62_v33, %v61_v32  ;;  %v175_v37 = vand.u32 2147483647, %v61_v32  ;;  %v63_v39 = vld [vmem:[#allocation6 + $0x60] sm:$0xff]  ;;  %v64_v40 = vld [vmem:[#allocation6 + $0x68] sm:$0xff] }
  0x2e   :  { %v176_v41 = vand.u32 2147483647, %v62_v33  ;;  %v323_v43 = vpack.c.bf16 %v64_v40, %v63_v39  ;;  %v177_v44 = vand.u32 2147483647, %v63_v39  ;;  %v65_v46 = vld [vmem:[#allocation6 + $0x70] sm:$0xff]  ;;  %v66_v47 = vld [vmem:[#allocation6 + $0x78] sm:$0xff] }
  0x2f   :  { %309 = vmatpush3.bf16.msra.mxu0 %v308_v9  ;;  %v183_v21 = vadd.f32 %v182_v17, %v168_v14  ;;  %v178_v48 = vand.u32 2147483647, %v64_v40  ;;  %v326_v50 = vpack.c.bf16 %v66_v47, %v65_v46  ;;  %v179_v51 = vand.u32 2147483647, %v65_v46  ;;  %v50_v55 = vld [vmem:[#allocation3] sm:$0xff]  ;;  %s237_s14 = sshll.u32 %s442_s1, 4  ;;  %s238_s14 = int_to_ptr.vmem [resolvable:$true] %s237_s14 }
  0x30   :  { %310 = vmatprep.subr.bf16.mxu0 %v439_v0  ;;  %v180_v53 = vand.u32 2147483647, %v66_v47  ;;  %s443_s16 = smov [#allocation8]   ;;  %v251_v2 = vld [vmem:[%s537_s2] ss:$0 sm:$0xff]  ;;  %s383_s20 = scalar_lea.vmem %s238_s14, 128 }
  0x31   :  { %v184_v24 = vadd.f32 %v183_v21, %v169_v16  ;;  %s227_s17 = sshll.u32 %s443_s16, 4  ;;  %p384_p2 = scmp.ne.s32.totalorder %s238_s14, %s383_s20  ;;  %s228_s17 = int_to_ptr.vmem [resolvable:$true] %s227_s17 }
  0x32   :  { %p388_p3 = scmp.lt.s32.totalorder %s238_s14, %s238_s14  ;;  %p389_p4 = scmp.lt.s32.totalorder %s383_s20, %s383_s20 }
  0x33   :  { %312 = vmatpush3.bf16.msra.mxu0 %v311_v15  ;;  %v185_v28 = vadd.f32 %v184_v24, %v170_v20 }
  0x34   :  { %313 = vmatprep.subr.bf16.mxu0 %v439_v0  ;;  %p390_p5 = por %p389_p4, %p388_p3 }
  0x35   :  { %v186_v31 = vadd.f32 %v185_v28, %v171_v23 }
  0x36   :  { %p391_p6 = pnand %p390_p5, %p384_p2 }
  0x37   :  { %315 = vmatpush3.bf16.msra.mxu0 %v314_v22  ;;  %v187_v35 = vadd.f32 %v186_v31, %v172_v27 }
  0x38   :  { %316 = vmatprep.subr.bf16.mxu0 %v439_v0 }
  0x39   :  { %v188_v38 = vadd.f32 %v187_v35, %v173_v30 }
  0x3b   :  { %318 = vmatpush3.bf16.msra.mxu0 %v317_v29  ;;  %v189_v42 = vadd.f32 %v188_v38, %v174_v34 }
  0x3c   :  { %319 = vmatprep.subr.bf16.mxu0 %v439_v0 }
  0x3d   :  { %v190_v45 = vadd.f32 %v189_v42, %v175_v37 }
  0x3f   :  { %321 = vmatpush3.bf16.msra.mxu0 %v320_v36  ;;  %v191_v49 = vadd.f32 %v190_v45, %v176_v41 }
  0x40   :  { %322 = vmatprep.subr.bf16.mxu0 %v439_v0 }
  0x41   :  { %v192_v52 = vadd.f32 %v191_v49, %v177_v44 }
  0x43   :  { %324 = vmatpush3.bf16.msra.mxu0 %v323_v43  ;;  %v193_v54 = vadd.f32 %v192_v52, %v178_v48 }
  0x44   :  { %325 = vmatprep.subr.bf16.mxu0 %v439_v0 }
  0x45   :  { %v194_v56 = vadd.f32 %v193_v54, %v179_v51 }
  0x47   :  { %327 = vmatpush3.bf16.msra.mxu0 %v326_v50  ;;  %v195_v57 = vadd.f32 %v194_v56, %v180_v53 }
  0x49   :  { %196 = vadd.xlane.f32.xlu0 %v195_v57 }
  0x4a   :  { %302 = vmatmul.mubr.f32.vlgmr.msra.gmra.mrb[0].mxu0 %v50_v55 }
  0xd6   :  { %v197_v58 = vpop.xlane.xlu0 %196 }
  0xd7   :  { %v198_v59 = vrot.slane %v197_v58, 4 }
  0xd9   :  { %v199_v60 = vadd.f32 %v198_v59, %v197_v58 }
  0xdb   :  { %v200_v61 = vrot.slane %v199_v60, 2 }
  0xdd   :  { %v201_v62 = vadd.f32 %v200_v61, %v199_v60 }
  0xdf   :  { %v202_v63 = vrot.slane %v201_v62, 1 }
  0xe1   :  { %v203_v1 = vadd.f32 %v202_v63, %v201_v62 }
  0xe3   :  { %328 = vpush %v203_v1 }
 0x114   :  { %s329_s15 = spop %328 }
 0x115   :  { %v205_v0 = vstv %s329_s15 }
 0x116   :  { %207 = vst [vmem:[#allocation9] sm:$0xff] %v205_v0 }
 0x117   :  { %394 = shalt.err (!%p391_p6)
}
 0x118   :  { %s395_s23 = scalar_lea.hbm %s539_s4, 128 }
 0x119   :  { %p396_p7 = scmp.ne.s32.totalorder %s539_s4, %s395_s23  ;;  %p399_p8 = scmp.lt.u32.totalorder %s395_s23, %s539_s4 }
 0x11b   :  { %p401_p9 = pnand %p399_p8, %p396_p7 }
 0x11d   :  { %404 = shalt.err (!%p401_p9)
}
 0x11e   :  { %240 = dma.vmem_to_hbm [thread:$0]  %s238_s14, 128, %s539_s4, [#allocation10]   ;;  %v133_v3 = vpop.f32.mrb[0].mxu0 }
 0x11f   :  { %v219_v4 = vadd.f32 %v251_v2, %v133_v3  ;;  %v303_v5 = vpop.f32.mrb[1].mxu0  ;;  %s405_s29 = scalar_lea.vmem %s228_s17, 128  ;;  %p410_p11 = scmp.lt.s32.totalorder %s228_s17, %s228_s17 }
 0x120   :  { %p406_p10 = scmp.ne.s32.totalorder %s228_s17, %s405_s29  ;;  %p411_p12 = scmp.lt.s32.totalorder %s405_s29, %s405_s29 }
 0x121   :  { %220 = vst [vmem:[#allocation8] sm:$0xff] %v219_v4 }
 0x122   :  { %p412_p13 = por %p411_p12, %p410_p11 }
 0x124   :  { %p413_p0 = pnand %p412_p13, %p406_p10 }
 0x126   :  { %416 = shalt.err (!%p413_p0)
}
 0x127   :  { %s417_s6 = scalar_lea.hbm %s538_s3, 128 }
 0x128   :  { %p418_p1 = scmp.ne.s32.totalorder %s538_s3, %s417_s6  ;;  %p421_p2 = scmp.lt.u32.totalorder %s417_s6, %s538_s3 }
 0x12a   :  { %p423_p3 = pnand %p421_p2, %p418_p1 }
 0x12c   :  { %426 = shalt.err (!%p423_p3)
}
 0x12d   :  { %230 = dma.vmem_to_hbm [thread:$0]  %s228_s17, 128, %s538_s3, [#allocation5]  }
 0x12e   :  { %431 = dma.done.wait [#allocation5], 128  }
 0x12f   :  { %432 = vsyncadd [#allocation5], 4294967168 }
 0x130   :  { %433 = dma.done.wait [#allocation10], 128  }
 0x131   :  { %434 = vsyncadd [#allocation10], 4294967168 }
 0x132   :  { %247 = vsyncpa [#allocation4], 1 }
 0x133   :  { %248 = vsyncpa [#allocation7], 1 }
 0x134   :  { %249 = vsyncpa [#allocation5], 1 }
 0x135   :  { %250 = vsyncpa [#allocation10], 1 }

</bundles_post_ra>
